<compile_context>
chip_gen: v6e
topology: v6e:2x2x1
jax: 0.10.0
libtpu: 0.0.40
codegen_flags: <defaults>
</compile_context>

<pallas_src>
import math

import jax
import jax.numpy as jnp
from jax.experimental import pallas as pl
from jax.experimental.pallas import tpu as pltpu

EPS = 1e-5  # nn.BatchNorm1d default eps


def _make_kernel(node_n, batch, feat):
    """Build the GC_Block kernel body for static shapes (N, B, F)."""
    N, B, F = node_n, batch, feat
    BF = B * F

    # Static row offsets inside the packed parameter buffers (all 8-aligned).
    # f32 pack rows: [bias1(8) | bias2(8) | g1(N) | be1(N) | g2(N) | be2(N) | P(BF)]
    B1_OFF, B2_OFF = 0, 8
    G1_OFF, BE1_OFF = 16, 16 + N
    G2_OFF, BE2_OFF = 16 + 2 * N, 16 + 3 * N
    P_OFF = 16 + 4 * N
    # bf16 pack rows: [kron(I_B,W1)(BF) | kron(I_B,W2)(BF) | att1(N) | att2(N)]
    W1_OFF, W2_OFF = 0, BF
    A1_OFF, A2_OFF = 2 * BF, 2 * BF + N

    def kernel(x_ref, fpk_ref, wpk_ref, out_ref):
        x = x_ref[...]  # (N, BF) f32, lane-dense (BF % 128 == 0)

        def gcn(y, w_off, a_off, b_off):
            # support[n, b*F+f] = sum_k y[n, b*F+k] * W[k, f]
            #   -> one 2-D MXU matmul against the block-diagonal kron(I_B, W).
            w_blk = wpk_ref[w_off:w_off + BF, :]                  # (BF, BF) bf16
            s = jnp.dot(y.astype(jnp.bfloat16), w_blk,
                        preferred_element_type=jnp.float32)
            # out[n, b*F+f] = sum_m att[n, m] * support[m, b*F+f]
            att = wpk_ref[a_off:a_off + N, 0:N]                   # (N, N) bf16
            o = jnp.dot(att, s.astype(jnp.bfloat16),
                        preferred_element_type=jnp.float32)
            return o + fpk_ref[b_off:b_off + 1, :]                # + bias (1, BF)

        def bn_tanh(y, g_off, be_off):
            # Training-mode BatchNorm1d(node_n*in_features) on y.view(B, -1):
            # per-(n, f) stats over the batch (biased variance).  The batch is
            # strided along lanes, so "mean over batch, broadcast back" is one
            # matmul against the constant P = kron(ones(B,B)/B, I_F).
            p_op = fpk_ref[P_OFF:P_OFF + BF, :]                   # (BF, BF) f32
            mean = jnp.dot(y, p_op, preferred_element_type=jnp.float32)
            d = y - mean
            var = jnp.dot(d * d, p_op, preferred_element_type=jnp.float32)
            y_hat = d * jax.lax.rsqrt(var + EPS)
            gamma = fpk_ref[g_off:g_off + N, :]
            beta = fpk_ref[be_off:be_off + N, :]
            return jnp.tanh(y_hat * gamma + beta)

        # gc1 -> bn1 -> tanh -> dropout(p_dropout=0.0 => identity)
        y = bn_tanh(gcn(x, W1_OFF, A1_OFF, B1_OFF), G1_OFF, BE1_OFF)
        # gc2 -> bn2 -> tanh -> dropout(p_dropout=0.0 => identity)
        y = bn_tanh(gcn(y, W2_OFF, A2_OFF, B2_OFF), G2_OFF, BE2_OFF)
        # residual, lane-dense store
        out_ref[...] = y + x

    return kernel


def prepare_kernel_params(params, batch):
    """One-time transform of PyTorch-layout params into 2 packed kernel buffers."""
    F = params["w1"].shape[0]
    N = params["att1"].shape[0]
    BF = batch * F
    f32 = jnp.float32

    # ---- bf16 pack: MXU operands -----------------------------------------
    eye_b = jnp.eye(batch, dtype=f32)
    w1_blk = jnp.kron(eye_b, params["w1"].astype(f32))            # (BF, BF)
    w2_blk = jnp.kron(eye_b, params["w2"].astype(f32))
    att1 = jnp.pad(params["att1"].astype(f32), ((0, 0), (0, BF - N)))
    att2 = jnp.pad(params["att2"].astype(f32), ((0, 0), (0, BF - N)))
    bf16_pack = jnp.concatenate([w1_blk, w2_blk, att1, att2],
                                axis=0).astype(jnp.bfloat16)      # (2*BF+2*N, BF)

    # ---- f32 pack: biases, BN affine params, batch-mean operator P ---------
    def bias_rows(b):        # (F,) -> (8, BF); bias tiled over batch in row 0
        row = jnp.tile(b.astype(f32), batch)[None, :]
        return jnp.pad(row, ((0, 7), (0, 0)))

    def nf_rows(v):          # (N*F,) -> (N, BF): [n, b*F+f] = v[n*F+f]
        return jnp.tile(v.astype(f32).reshape(N, F), (1, batch))

    p_op = jnp.kron(jnp.ones((batch, batch), f32) / batch,
                    jnp.eye(F, dtype=f32))                        # (BF, BF)
    f32_pack = jnp.concatenate(
        [bias_rows(params["b1"]), bias_rows(params["b2"]),
         nf_rows(params["gamma1"]), nf_rows(params["beta1"]),
         nf_rows(params["gamma2"]), nf_rows(params["beta2"]),
         p_op], axis=0)                                           # (16+4*N+BF, BF)
    return f32_pack, bf16_pack


def gc_block_forward(x, params):
    """x: (B, N, F) float32. Returns (B, N, F), matching GC_Block.forward."""
    B, N, F = x.shape
    BF = B * F
    f32_pack, bf16_pack = prepare_kernel_params(params, B)

    # n-major, lane-dense activation layout: x_l[n, b*F+f] = x[b, n, f]
    x_l = jnp.transpose(x, (1, 0, 2)).reshape(N, BF).astype(jnp.float32)

    vmem = pl.BlockSpec(memory_space=pltpu.MemorySpace.VMEM)
    flops = 2 * (2 * N * BF * BF * 3 + 2 * N * N * BF)  # 2 gcn + 2 BN matmuls / layer
    bytes_accessed = (x_l.size + f32_pack.size + N * BF) * 4 + bf16_pack.size * 2
    cost = pl.CostEstimate(flops=int(flops),
                           transcendentals=int(4 * N * BF),
                           bytes_accessed=int(bytes_accessed))

    out_l = pl.pallas_call(
        _make_kernel(N, B, F),
        out_shape=jax.ShapeDtypeStruct((N, BF), jnp.float32),
        in_specs=[vmem, vmem, vmem],
        out_specs=vmem,
        cost_estimate=cost,
        compiler_params=pltpu.CompilerParams(vmem_limit_bytes=16 * 1024 * 1024),
    )(x_l, f32_pack, bf16_pack)

    # back to the module's (B, N, F) layout (cheap XLA-side layout plumbing)
    return jnp.transpose(out_l.reshape(N, B, F), (1, 0, 2))


def init_params(key, node_n, in_features):
    """Parameters in the PyTorch module's native shapes / init (reset_parameters)."""
    stdv = 1.0 / math.sqrt(in_features)
    ks = jax.random.split(key, 6)

    def uni(k, shape):
        return jax.random.uniform(k, shape, jnp.float32, -stdv, stdv)

    return {
        "w1": uni(ks[0], (in_features, in_features)),
        "att1": uni(ks[1], (node_n, node_n)),
        "b1": uni(ks[2], (in_features,)),
        "gamma1": jnp.ones((node_n * in_features,), jnp.float32),
        "beta1": jnp.zeros((node_n * in_features,), jnp.float32),
        "w2": uni(ks[3], (in_features, in_features)),
        "att2": uni(ks[4], (node_n, node_n)),
        "b2": uni(ks[5], (in_features,)),
        "gamma2": jnp.ones((node_n * in_features,), jnp.float32),
        "beta2": jnp.zeros((node_n * in_features,), jnp.float32),
    }


def gc_block_reference(x, p):
    """Pure-f32 JAX reference of GC_Block.forward (training-mode BN, p_dropout=0)."""
    def gcn(inp, w, att, b):
        support = jnp.einsum("bnf,fg->bng", inp, w)
        return jnp.einsum("nm,bmg->bng", att, support) + b   # b: (F,) broadcasts

    def bn(y, g, be):
        B_, N_, F_ = y.shape
        y2 = y.reshape(B_, N_ * F_)
        m = jnp.mean(y2, axis=0, keepdims=True)
        v = jnp.mean((y2 - m) ** 2, axis=0, keepdims=True)   # biased variance
        y2 = (y2 - m) / jnp.sqrt(v + EPS) * g + be
        return y2.reshape(B_, N_, F_)

    y = jnp.tanh(bn(gcn(x, p["w1"], p["att1"], p["b1"]), p["gamma1"], p["beta1"]))
    y = jnp.tanh(bn(gcn(y, p["w2"], p["att2"], p["b2"]), p["gamma2"], p["beta2"]))
    return y + x


if __name__ == "__main__":
    # GC_Block(in_features=32, p_dropout=0.0, node_n=16) with batch=8.
    # (batch * in_features = 256 keeps the kernel's lane axis a multiple of 128.)
    B, NODE_N, FEAT = 8, 16, 32

    key = jax.random.PRNGKey(0)
    k_x, k_p = jax.random.split(key)
    x = jax.random.normal(k_x, (B, NODE_N, FEAT), dtype=jnp.float32)
    params = init_params(k_p, NODE_N, FEAT)

    out = jax.block_until_ready(gc_block_forward(x, params))
    ref = gc_block_reference(x, params)

    assert out.shape == (B, NODE_N, FEAT)
    # GCN matmuls use bf16 MXU operands with f32 accumulation -> compare at a
    # bf16-appropriate tolerance against the pure-f32 reference.
    assert jnp.allclose(out, ref, atol=3e-2, rtol=3e-2), "mismatch vs JAX reference"

    print("KERNEL_OK")
</pallas_src>

<mosaic_0001>
module attributes {stable_mosaic.version = 11 : i64} {
  func.func @kernel(%arg0: memref<16x256xf32, #tpu.memory_space<vmem>>, %arg1: memref<336x256xf32, #tpu.memory_space<vmem>>, %arg2: memref<544x256xbf16, #tpu.memory_space<vmem>>, %arg3: memref<16x256xf32, #tpu.memory_space<vmem>>) attributes {dimension_semantics = [], scalar_prefetch = 0 : i64, scratch_operands = 0 : i64, tpu.core_type = #tpu.core_type<tc>} {
    %c0 = arith.constant 0 : index
    %c0_0 = arith.constant 0 : index
    %0 = vector.load %arg0[%c0, %c0_0] : memref<16x256xf32, #tpu.memory_space<vmem>>, vector<16x256xf32>
    %c0_1 = arith.constant 0 : index
    %c0_2 = arith.constant 0 : index
    %1 = vector.load %arg2[%c0_1, %c0_2] : memref<544x256xbf16, #tpu.memory_space<vmem>>, vector<256x256xbf16>
    %2 = arith.truncf %0 : vector<16x256xf32> to vector<16x256xbf16>
    %cst = arith.constant dense<0.000000e+00> : vector<16x256xf32>
    %3 = tpu.matmul %2, %1, %cst {dimension_numbers = #tpu.dot_dimension_numbers<[1], [0], [0], [1], [0, 0, 1, 1], [], []>} : vector<16x256xbf16>, vector<256x256xbf16>, vector<16x256xf32> -> vector<16x256xf32>
    %c512 = arith.constant 512 : index
    %c0_3 = arith.constant 0 : index
    %4 = vector.load %arg2[%c512, %c0_3] : memref<544x256xbf16, #tpu.memory_space<vmem>>, vector<16x16xbf16>
    %5 = arith.truncf %3 : vector<16x256xf32> to vector<16x256xbf16>
    %cst_4 = arith.constant dense<0.000000e+00> : vector<16x256xf32>
    %6 = tpu.matmul %4, %5, %cst_4 {dimension_numbers = #tpu.dot_dimension_numbers<[1], [0], [0], [1], [0, 0, 1, 1], [], []>} : vector<16x16xbf16>, vector<16x256xbf16>, vector<16x256xf32> -> vector<16x256xf32>
    %c0_5 = arith.constant 0 : index
    %c0_6 = arith.constant 0 : index
    %7 = vector.load %arg1[%c0_5, %c0_6] : memref<336x256xf32, #tpu.memory_space<vmem>>, vector<1x256xf32>
    %8 = vector.broadcast %7 : vector<1x256xf32> to vector<16x256xf32>
    %9 = arith.addf %6, %8 : vector<16x256xf32>
    %c80 = arith.constant 80 : index
    %c0_7 = arith.constant 0 : index
    %10 = vector.load %arg1[%c80, %c0_7] : memref<336x256xf32, #tpu.memory_space<vmem>>, vector<256x256xf32>
    %cst_8 = arith.constant dense<0.000000e+00> : vector<16x256xf32>
    %11 = tpu.matmul %9, %10, %cst_8 {dimension_numbers = #tpu.dot_dimension_numbers<[1], [0], [0], [1], [0, 0, 1, 1], [], []>} : vector<16x256xf32>, vector<256x256xf32>, vector<16x256xf32> -> vector<16x256xf32>
    %12 = arith.subf %9, %11 : vector<16x256xf32>
    %13 = arith.mulf %12, %12 : vector<16x256xf32>
    %cst_9 = arith.constant dense<0.000000e+00> : vector<16x256xf32>
    %14 = tpu.matmul %13, %10, %cst_9 {dimension_numbers = #tpu.dot_dimension_numbers<[1], [0], [0], [1], [0, 0, 1, 1], [], []>} : vector<16x256xf32>, vector<256x256xf32>, vector<16x256xf32> -> vector<16x256xf32>
    %cst_10 = arith.constant 9.99999974E-6 : f32
    %15 = vector.broadcast %cst_10 : f32 to vector<16x256xf32>
    %16 = arith.addf %14, %15 : vector<16x256xf32>
    %17 = math.rsqrt %16 : vector<16x256xf32>
    %18 = arith.mulf %12, %17 : vector<16x256xf32>
    %c16 = arith.constant 16 : index
    %c0_11 = arith.constant 0 : index
    %19 = vector.load %arg1[%c16, %c0_11] : memref<336x256xf32, #tpu.memory_space<vmem>>, vector<16x256xf32>
    %c32 = arith.constant 32 : index
    %c0_12 = arith.constant 0 : index
    %20 = vector.load %arg1[%c32, %c0_12] : memref<336x256xf32, #tpu.memory_space<vmem>>, vector<16x256xf32>
    %21 = arith.mulf %18, %19 : vector<16x256xf32>
    %22 = arith.addf %21, %20 : vector<16x256xf32>
    %23 = math.tanh %22 : vector<16x256xf32>
    %c256 = arith.constant 256 : index
    %c0_13 = arith.constant 0 : index
    %24 = vector.load %arg2[%c256, %c0_13] : memref<544x256xbf16, #tpu.memory_space<vmem>>, vector<256x256xbf16>
    %25 = arith.truncf %23 : vector<16x256xf32> to vector<16x256xbf16>
    %cst_14 = arith.constant dense<0.000000e+00> : vector<16x256xf32>
    %26 = tpu.matmul %25, %24, %cst_14 {dimension_numbers = #tpu.dot_dimension_numbers<[1], [0], [0], [1], [0, 0, 1, 1], [], []>} : vector<16x256xbf16>, vector<256x256xbf16>, vector<16x256xf32> -> vector<16x256xf32>
    %c528 = arith.constant 528 : index
    %c0_15 = arith.constant 0 : index
    %27 = vector.load %arg2[%c528, %c0_15] : memref<544x256xbf16, #tpu.memory_space<vmem>>, vector<16x16xbf16>
    %28 = arith.truncf %26 : vector<16x256xf32> to vector<16x256xbf16>
    %cst_16 = arith.constant dense<0.000000e+00> : vector<16x256xf32>
    %29 = tpu.matmul %27, %28, %cst_16 {dimension_numbers = #tpu.dot_dimension_numbers<[1], [0], [0], [1], [0, 0, 1, 1], [], []>} : vector<16x16xbf16>, vector<16x256xbf16>, vector<16x256xf32> -> vector<16x256xf32>
    %c8 = arith.constant 8 : index
    %c0_17 = arith.constant 0 : index
    %30 = vector.load %arg1[%c8, %c0_17] : memref<336x256xf32, #tpu.memory_space<vmem>>, vector<1x256xf32>
    %31 = vector.broadcast %30 : vector<1x256xf32> to vector<16x256xf32>
    %32 = arith.addf %29, %31 : vector<16x256xf32>
    %c80_18 = arith.constant 80 : index
    %c0_19 = arith.constant 0 : index
    %33 = vector.load %arg1[%c80_18, %c0_19] : memref<336x256xf32, #tpu.memory_space<vmem>>, vector<256x256xf32>
    %cst_20 = arith.constant dense<0.000000e+00> : vector<16x256xf32>
    %34 = tpu.matmul %32, %33, %cst_20 {dimension_numbers = #tpu.dot_dimension_numbers<[1], [0], [0], [1], [0, 0, 1, 1], [], []>} : vector<16x256xf32>, vector<256x256xf32>, vector<16x256xf32> -> vector<16x256xf32>
    %35 = arith.subf %32, %34 : vector<16x256xf32>
    %36 = arith.mulf %35, %35 : vector<16x256xf32>
    %cst_21 = arith.constant dense<0.000000e+00> : vector<16x256xf32>
    %37 = tpu.matmul %36, %33, %cst_21 {dimension_numbers = #tpu.dot_dimension_numbers<[1], [0], [0], [1], [0, 0, 1, 1], [], []>} : vector<16x256xf32>, vector<256x256xf32>, vector<16x256xf32> -> vector<16x256xf32>
    %cst_22 = arith.constant 9.99999974E-6 : f32
    %38 = vector.broadcast %cst_22 : f32 to vector<16x256xf32>
    %39 = arith.addf %37, %38 : vector<16x256xf32>
    %40 = math.rsqrt %39 : vector<16x256xf32>
    %41 = arith.mulf %35, %40 : vector<16x256xf32>
    %c48 = arith.constant 48 : index
    %c0_23 = arith.constant 0 : index
    %42 = vector.load %arg1[%c48, %c0_23] : memref<336x256xf32, #tpu.memory_space<vmem>>, vector<16x256xf32>
    %c64 = arith.constant 64 : index
    %c0_24 = arith.constant 0 : index
    %43 = vector.load %arg1[%c64, %c0_24] : memref<336x256xf32, #tpu.memory_space<vmem>>, vector<16x256xf32>
    %44 = arith.mulf %41, %42 : vector<16x256xf32>
    %45 = arith.addf %44, %43 : vector<16x256xf32>
    %46 = math.tanh %45 : vector<16x256xf32>
    %47 = arith.addf %46, %0 : vector<16x256xf32>
    %c0_25 = arith.constant 0 : index
    %c0_26 = arith.constant 0 : index
    %48 = vector.load %arg3[%c0_25, %c0_26] : memref<16x256xf32, #tpu.memory_space<vmem>>, vector<16x256xf32>
    tpu.vector_store %arg3[%c0_25, %c0_26], %47 {strides = array<i32>} : memref<16x256xf32, #tpu.memory_space<vmem>>, vector<16x256xf32>,
    return
  }
}

</mosaic_0001>

<bundles_post_ra>
// kernel: tpu_custom_call.1
= control target key start
LH: loop header
LB: loop body
LE: loop exit
PB: predicated region body
PF: predicated region fallthrough
CT: control target
= control target key end

     0   :  { %8 = vsyncpa [#allocation3], 0  ;;  %s1908_s0 = inlined_call_operand.hbm [shape: f32[16,256], index: 0, kind: input, shape index: {}]   ;;  %s1909_s1 = inlined_call_operand.hbm [shape: f32[336,256], index: 1, kind: input, shape index: {}]   ;;  %s1910_s2 = inlined_call_operand.hbm [shape: bf16[544,256], index: 2, kind: input, shape index: {}]   ;;  %s1911_s3 = inlined_call_operand.hbm [shape: f32[16,256], index: 3, kind: output, shape index: {}]  }
   0x1   :  { %9 = vsyncpa [#allocation6], 0 }
   0x2   :  { %10 = vsyncpa [#allocation4], 0  ;;  %s1438_s12 = smov [#allocation5]   ;;  %s1439_s14 = smov [#allocation2]  }
   0x3   :  { %s28_s13 = sshll.u32 %s1438_s12, 4  ;;  %s16_s15 = sshll.u32 %s1439_s14, 4  ;;  %s29_s13 = int_to_ptr.vmem [resolvable:$true] %s28_s13  ;;  %s17_s15 = int_to_ptr.vmem [resolvable:$true] %s16_s15 }
   0x4   :  { %s1360_s16 = scalar_lea.vmem %s29_s13, 10752  ;;  %p1365_p1 = scmp.lt.s32.totalorder %s29_s13, %s29_s13 }
   0x5   :  { %p1361_p0 = scmp.ne.s32.totalorder %s29_s13, %s1360_s16  ;;  %p1366_p2 = scmp.lt.s32.totalorder %s1360_s16, %s1360_s16 }
   0x7   :  { %p1367_p3 = por %p1366_p2, %p1365_p1 }
   0x9   :  { %p1368_p4 = pnand %p1367_p3, %p1361_p0 }
   0xb   :  { %1371 = shalt.err (!%p1368_p4)
}
   0xc   :  { %s1440_s17 = smov 256   ;;  %s1441_s18 = smov 16  }
   0xd   :  { %34 = dma.hbm_to_vmem [thread:$0]  %s1909_s1, 10752, %s29_s13, [#allocation6], %s1440_s17, %s1440_s17, %s1441_s18  }
   0xe   :  { %s1380_s21 = scalar_lea.vmem %s17_s15, 512  ;;  %p1385_p6 = scmp.lt.s32.totalorder %s17_s15, %s17_s15 }
   0xf   :  { %p1381_p5 = scmp.ne.s32.totalorder %s17_s15, %s1380_s21  ;;  %p1386_p7 = scmp.lt.s32.totalorder %s1380_s21, %s1380_s21 }
  0x11   :  { %p1387_p8 = por %p1386_p7, %p1385_p6 }
  0x13   :  { %p1388_p9 = pnand %p1387_p8, %p1381_p5 }
  0x15   :  { %1391 = shalt.err (!%p1388_p9)
}
  0x16   :  { %22 = dma.hbm_to_vmem [thread:$0]  %s1908_s0, 512, %s17_s15, [#allocation3], %s1440_s17, %s1440_s17, %s1441_s18  }
  0x17   :  { %s1442_s24 = smov [#allocation7]  }
  0x18   :  { %s40_s25 = sshll.u32 %s1442_s24, 4  ;;  %s41_s25 = int_to_ptr.vmem [resolvable:$true] %s40_s25 }
  0x19   :  { %s1400_s26 = scalar_lea.vmem %s41_s25, 8704  ;;  %p1405_p11 = scmp.lt.s32.totalorder %s41_s25, %s41_s25 }
  0x1a   :  { %p1401_p10 = scmp.ne.s32.totalorder %s41_s25, %s1400_s26  ;;  %p1406_p12 = scmp.lt.s32.totalorder %s1400_s26, %s1400_s26 }
  0x1c   :  { %p1407_p13 = por %p1406_p12, %p1405_p11 }
  0x1e   :  { %p1408_p0 = pnand %p1407_p13, %p1401_p10 }
  0x20   :  { %1411 = shalt.err (!%p1408_p0)
}
  0x21   :  { %s1443_s1 = smov 128   ;;  %s1444_s27 = smov 8  }
  0x22   :  { %46 = dma.hbm_to_vmem [thread:$0]  %s1910_s2, 8704, %s41_s25, [#allocation6], %s1443_s1, %s1443_s1, %s1444_s27  }
  0x23   :  { %1432 = dma.done.wait [#allocation3], 512  }
  0x24   :  { %1433 = vsyncadd [#allocation3], 4294966784 }
  0x25   :  { %1434 = dma.done.wait [#allocation6], 19456  }
  0x26   :  { %1435 = vsyncadd [#allocation6], 4294947840  ;;  %v1218_v0 = vld [vmem:[#allocation7 + $0x74] ss:$8 sps:$4 sm:$0xff]   ;;  %v1220_v1 = vld [vmem:[#allocation7 + $0x70] ss:$8 sps:$4 sm:$0xff]  }
  0x27   :  { %255 = vmatprep.subr.bf16.mxu0 %v1218_v0  ;;  %v1221_v2 = vld [vmem:[#allocation7 + $0x64] ss:$8 sps:$4 sm:$0xff]   ;;  %v1223_v3 = vld [vmem:[#allocation7 + $0x60] ss:$8 sps:$4 sm:$0xff]   ;;  %v1224_v4 = vld [vmem:[#allocation7 + $0x54] ss:$8 sps:$4 sm:$0xff]  }
  0x28   :  { %256 = vmatpush1.bf16.msra.mxu0 %v1220_v1  ;;  %v1226_v5 = vld [vmem:[#allocation7 + $0x50] ss:$8 sps:$4 sm:$0xff]   ;;  %v1227_v6 = vld [vmem:[#allocation7 + $0x44] ss:$8 sps:$4 sm:$0xff]   ;;  %v1229_v7 = vld [vmem:[#allocation7 + $0x40] ss:$8 sps:$4 sm:$0xff]  }
  0x29   :  { %257 = vmatprep.subr.bf16.mxu0 %v1221_v2  ;;  %v1230_v8 = vld [vmem:[#allocation7 + $0x34] ss:$8 sps:$4 sm:$0xff]   ;;  %v1232_v9 = vld [vmem:[#allocation7 + $0x30] ss:$8 sps:$4 sm:$0xff]   ;;  %v1233_v10 = vld [vmem:[#allocation7 + $0x24] ss:$8 sps:$4 sm:$0xff]  }
  0x2a   :  { %v1235_v11 = vld [vmem:[#allocation7 + $0x20] ss:$8 sps:$4 sm:$0xff]   ;;  %v1236_v12 = vld [vmem:[#allocation7 + $0x14] ss:$8 sps:$4 sm:$0xff]   ;;  %v1238_v15 = vld [vmem:[#allocation7 + $0x10] ss:$8 sps:$4 sm:$0xff]  }
  0x2b   :  { %v58_v13 = vld [vmem:[#allocation2 + $0x8] sm:$0xff]  ;;  %v60_v14 = vld [vmem:[#allocation2 + $0x18] sm:$0xff]  ;;  %v57_v35 = vld [vmem:[#allocation2] sm:$0xff]  ;;  %v1912_v38 = vmov 0   ;;  %vm319_vm0 = vcmask 130048   ;;  %s1446_s0 = smov [#allocation8]  }
  0x2c   :  { %258 = vmatpush1.bf16.msra.mxu0 %v1223_v3  ;;  %v1239_v16 = vld [vmem:[#allocation7 + $0x4] ss:$8 sps:$4 sm:$0xff]   ;;  %v94_v17 = vpack.c.bf16 %v60_v14, %v58_v13  ;;  %v1241_v18 = vld [vmem:[#allocation7] ss:$8 sps:$4 sm:$0xff]   ;;  %v1242_v19 = vld [vmem:[#allocation7 + $0xf4] ss:$8 sps:$4 sm:$0xff]   ;;  %355 = vmatprep.mubr.bf16.mxu1 %v1912_v38 }
  0x2d   :  { %259 = vmatprep.subr.bf16.mxu0 %v1224_v4  ;;  %v1244_v20 = vld [vmem:[#allocation7 + $0xf0] ss:$8 sps:$4 sm:$0xff]   ;;  %v1245_v21 = vld [vmem:[#allocation7 + $0xe4] ss:$8 sps:$4 sm:$0xff]   ;;  %v1247_v22 = vld [vmem:[#allocation7 + $0xe0] ss:$8 sps:$4 sm:$0xff]  }
  0x2e   :  { %287 = vmatprep.mubr.bf16.mxu0 %v94_v17  ;;  %v1248_v23 = vld [vmem:[#allocation7 + $0xd4] ss:$8 sps:$4 sm:$0xff]   ;;  %v1250_v24 = vld [vmem:[#allocation7 + $0xd0] ss:$8 sps:$4 sm:$0xff]   ;;  %v1251_v25 = vld [vmem:[#allocation7 + $0xc4] ss:$8 sps:$4 sm:$0xff]  }
  0x2f   :  { %v1253_v26 = vld [vmem:[#allocation7 + $0xc0] ss:$8 sps:$4 sm:$0xff]   ;;  %v1254_v27 = vld [vmem:[#allocation7 + $0xb4] ss:$8 sps:$4 sm:$0xff]   ;;  %v1256_v28 = vld [vmem:[#allocation7 + $0xb0] ss:$8 sps:$4 sm:$0xff]  }
  0x30   :  { %260 = vmatpush1.bf16.msra.mxu0 %v1226_v5  ;;  %v1257_v29 = vld [vmem:[#allocation7 + $0xa4] ss:$8 sps:$4 sm:$0xff]   ;;  %v1259_v30 = vld [vmem:[#allocation7 + $0xa0] ss:$8 sps:$4 sm:$0xff]   ;;  %v1260_v31 = vld [vmem:[#allocation7 + $0x94] ss:$8 sps:$4 sm:$0xff]  }
  0x31   :  { %261 = vmatprep.subr.bf16.mxu0 %v1227_v6  ;;  %v1262_v32 = vld [vmem:[#allocation7 + $0x90] ss:$8 sps:$4 sm:$0xff]   ;;  %v1263_v33 = vld [vmem:[#allocation7 + $0x84] ss:$8 sps:$4 sm:$0xff]   ;;  %v1265_v34 = vld [vmem:[#allocation7 + $0x80] ss:$8 sps:$4 sm:$0xff]  }
  0x32   :  { %v59_v36 = vld [vmem:[#allocation2 + $0x10] sm:$0xff]  ;;  %v1483_v39 = vld [vmem:[#allocation5 + $0x198] sm:$0xff]  ;;  %v1488_v41 = vld [vmem:[#allocation5 + $0x188] sm:$0xff]  ;;  %s1128_s2 = sshll.u32 %s1446_s0, 4  ;;  %s1129_s2 = int_to_ptr.vmem [resolvable:$true] %s1128_s2 }
  0x33   :  { %v93_v37 = vpack.c.bf16 %v59_v36, %v57_v35  ;;  %1966 = vst [vmem:[#allocation12_spill] sm:$0xff] %v1483_v39  ;;  %v1485_v40 = vld [vmem:[#allocation5 + $0x190] sm:$0xff]  ;;  %v1491_v42 = vld [vmem:[#allocation5 + $0x180] sm:$0xff]  ;;  %v1494_v43 = vld [vmem:[#allocation5 + $0x178] sm:$0xff]  ;;  %s1412_s30 = scalar_lea.vmem %s1129_s2, 512  ;;  %p1417_p2 = scmp.lt.s32.totalorder %s1129_s2, %s1129_s2 }
  0x34   :  { %262 = vmatpush1.bf16.msra.mxu0 %v1229_v7  ;;  %v1497_v44 = vld [vmem:[#allocation5 + $0x170] sm:$0xff]  ;;  %v1500_v45 = vld [vmem:[#allocation5 + $0x168] sm:$0xff]  ;;  %v1503_v46 = vld [vmem:[#allocation5 + $0x160] sm:$0xff]  ;;  %p1413_p1 = scmp.ne.s32.totalorder %s1129_s2, %s1412_s30  ;;  %p1418_p3 = scmp.lt.s32.totalorder %s1412_s30, %s1412_s30 }
  0x35   :  { %263 = vmatprep.subr.bf16.mxu0 %v1230_v8  ;;  %v1506_v47 = vld [vmem:[#allocation5 + $0x158] sm:$0xff]  ;;  %v1509_v48 = vld [vmem:[#allocation5 + $0x150] sm:$0xff]  ;;  %v1512_v49 = vld [vmem:[#allocation5 + $0x148] sm:$0xff] }
  0x36   :  { %v1515_v50 = vld [vmem:[#allocation5 + $0x140] sm:$0xff]  ;;  %v1518_v51 = vld [vmem:[#allocation5 + $0x138] sm:$0xff]  ;;  %v1521_v52 = vld [vmem:[#allocation5 + $0x130] sm:$0xff]  ;;  %p1419_p4 = por %p1418_p3, %p1417_p2 }
  0x37   :  { %v1524_v53 = vld [vmem:[#allocation5 + $0x128] sm:$0xff]  ;;  %v1527_v54 = vld [vmem:[#allocation5 + $0x120] sm:$0xff]  ;;  %v1530_v55 = vld [vmem:[#allocation5 + $0x118] sm:$0xff] }
  0x38   :  { %264 = vmatpush1.bf16.msra.mxu0 %v1232_v9  ;;  %v1533_v56 = vld [vmem:[#allocation5 + $0x110] sm:$0xff]  ;;  %v1536_v57 = vld [vmem:[#allocation5 + $0x108] sm:$0xff]  ;;  %v1539_v58 = vld [vmem:[#allocation5 + $0x100] sm:$0xff]  ;;  %p1420_p5 = pnand %p1419_p4, %p1413_p1 }
  0x39   :  { %265 = vmatprep.subr.bf16.mxu0 %v1233_v10  ;;  %v1542_v59 = vld [vmem:[#allocation5 + $0xf8] sm:$0xff]  ;;  %v1545_v60 = vld [vmem:[#allocation5 + $0xf0] sm:$0xff]  ;;  %v1548_v61 = vld [vmem:[#allocation5 + $0xe8] sm:$0xff] }
  0x3a   :  { %v1551_v62 = vld [vmem:[#allocation5 + $0xe0] sm:$0xff]  ;;  %v1554_v63 = vld [vmem:[#allocation5 + $0xd8] sm:$0xff]  ;;  %v1557_v0 = vld [vmem:[#allocation5 + $0xd0] sm:$0xff] }
  0x3b   :  { %v1560_v1 = vld [vmem:[#allocation5 + $0xc8] sm:$0xff]  ;;  %v1563_v2 = vld [vmem:[#allocation5 + $0xc0] sm:$0xff]  ;;  %v1566_v3 = vld [vmem:[#allocation5 + $0xb8] sm:$0xff] }
  0x3c   :  { %266 = vmatpush1.bf16.msra.mxu0 %v1235_v11  ;;  %v1569_v4 = vld [vmem:[#allocation5 + $0xb0] sm:$0xff]  ;;  %v1572_v5 = vld [vmem:[#allocation5 + $0xa8] sm:$0xff]  ;;  %v1575_v6 = vld [vmem:[#allocation5 + $0xa0] sm:$0xff] }
  0x3d   :  { %267 = vmatprep.subr.bf16.mxu0 %v1236_v12  ;;  %v1578_v7 = vld [vmem:[#allocation5 + $0x298] sm:$0xff]  ;;  %v1581_v8 = vld [vmem:[#allocation5 + $0x290] sm:$0xff]  ;;  %v1584_v9 = vld [vmem:[#allocation5 + $0x288] sm:$0xff] }
  0x3e   :  { %v1587_v10 = vld [vmem:[#allocation5 + $0x280] sm:$0xff]  ;;  %v1590_v11 = vld [vmem:[#allocation5 + $0x278] sm:$0xff]  ;;  %v1593_v12 = vld [vmem:[#allocation5 + $0x270] sm:$0xff] }
  0x3f   :  { %v1596_v13 = vld [vmem:[#allocation5 + $0x268] sm:$0xff]  ;;  %v1599_v14 = vld [vmem:[#allocation5 + $0x260] sm:$0xff] }
  0x40   :  { %268 = vmatpush1.bf16.msra.mxu0 %v1238_v15  ;;  %v1602_v15 = vld [vmem:[#allocation5 + $0x258] sm:$0xff]  ;;  %v1608_v17 = vld [vmem:[#allocation5 + $0x248] sm:$0xff] }
  0x41   :  { %269 = vmatprep.subr.bf16.mxu0 %v1239_v16  ;;  %1967 = vst [vmem:[#allocation13_spill] sm:$0xff] %v1602_v15  ;;  %v1605_v16 = vld [vmem:[#allocation5 + $0x250] sm:$0xff]  ;;  %1969 = vst [vmem:[#allocation15_spill] sm:$0xff] %v1608_v17 }
  0x42   :  { %1968 = vst [vmem:[#allocation14_spill] sm:$0xff] %v1605_v16 }
  0x44   :  { %270 = vmatpush1.bf16.msra.mxu0 %v1241_v18  ;;  %v1611_v18 = vld [vmem:[#allocation5 + $0x240] sm:$0xff] }
  0x45   :  { %271 = vmatprep.subr.bf16.mxu0 %v1242_v19  ;;  %1970 = vst [vmem:[#allocation16_spill] sm:$0xff] %v1611_v18  ;;  %v1614_v19 = vld [vmem:[#allocation5 + $0x238] sm:$0xff] }
  0x46   :  { %1971 = vst [vmem:[#allocation17_spill] sm:$0xff] %v1614_v19 }
  0x48   :  { %272 = vmatpush2.bf16.msra.mxu0 %v1244_v20  ;;  %v1617_v20 = vld [vmem:[#allocation5 + $0x230] sm:$0xff] }
  0x49   :  { %273 = vmatprep.subr.bf16.mxu0 %v1245_v21  ;;  %1972 = vst [vmem:[#allocation18_spill] sm:$0xff] %v1617_v20  ;;  %v1620_v21 = vld [vmem:[#allocation5 + $0x228] sm:$0xff] }
  0x4a   :  { %1973 = vst [vmem:[#allocation19_spill] sm:$0xff] %v1620_v21 }
  0x4c   :  { %274 = vmatpush2.bf16.msra.mxu0 %v1247_v22  ;;  %v1623_v22 = vld [vmem:[#allocation5 + $0x220] sm:$0xff] }
  0x4d   :  { %275 = vmatprep.subr.bf16.mxu0 %v1248_v23  ;;  %1974 = vst [vmem:[#allocation20_spill] sm:$0xff] %v1623_v22  ;;  %v1626_v23 = vld [vmem:[#allocation5 + $0x218] sm:$0xff] }
  0x4e   :  { %1975 = vst [vmem:[#allocation21_spill] sm:$0xff] %v1626_v23 }
  0x50   :  { %276 = vmatpush2.bf16.msra.mxu0 %v1250_v24  ;;  %v1629_v24 = vld [vmem:[#allocation5 + $0x210] sm:$0xff] }
  0x51   :  { %277 = vmatprep.subr.bf16.mxu0 %v1251_v25  ;;  %1976 = vst [vmem:[#allocation22_spill] sm:$0xff] %v1629_v24  ;;  %v1632_v25 = vld [vmem:[#allocation5 + $0x208] sm:$0xff] }
  0x52   :  { %1977 = vst [vmem:[#allocation23_spill] sm:$0xff] %v1632_v25 }
  0x54   :  { %278 = vmatpush2.bf16.msra.mxu0 %v1253_v26  ;;  %v1635_v26 = vld [vmem:[#allocation5 + $0x200] sm:$0xff] }
  0x55   :  { %279 = vmatprep.subr.bf16.mxu0 %v1254_v27  ;;  %1978 = vst [vmem:[#allocation24_spill] sm:$0xff] %v1635_v26  ;;  %v1638_v27 = vld [vmem:[#allocation5 + $0x1f8] sm:$0xff] }
  0x56   :  { %1979 = vst [vmem:[#allocation25_spill] sm:$0xff] %v1638_v27 }
  0x58   :  { %280 = vmatpush2.bf16.msra.mxu0 %v1256_v28  ;;  %v1641_v28 = vld [vmem:[#allocation5 + $0x1f0] sm:$0xff] }
  0x59   :  { %281 = vmatprep.subr.bf16.mxu0 %v1257_v29  ;;  %1980 = vst [vmem:[#allocation26_spill] sm:$0xff] %v1641_v28  ;;  %v1644_v29 = vld [vmem:[#allocation5 + $0x1e8] sm:$0xff] }
  0x5a   :  { %1981 = vst [vmem:[#allocation27_spill] sm:$0xff] %v1644_v29 }
  0x5c   :  { %282 = vmatpush2.bf16.msra.mxu0 %v1259_v30  ;;  %v1647_v30 = vld [vmem:[#allocation5 + $0x1e0] sm:$0xff] }
  0x5d   :  { %283 = vmatprep.subr.bf16.mxu0 %v1260_v31  ;;  %1982 = vst [vmem:[#allocation28_spill] sm:$0xff] %v1647_v30  ;;  %v1650_v31 = vld [vmem:[#allocation5 + $0x1d8] sm:$0xff] }
  0x5e   :  { %1983 = vst [vmem:[#allocation29_spill] sm:$0xff] %v1650_v31 }
  0x60   :  { %284 = vmatpush2.bf16.msra.mxu0 %v1262_v32  ;;  %v1653_v32 = vld [vmem:[#allocation5 + $0x1d0] sm:$0xff] }
  0x61   :  { %285 = vmatprep.subr.bf16.mxu0 %v1263_v33  ;;  %1984 = vst [vmem:[#allocation30_spill] sm:$0xff] %v1653_v32 }
  0x64   :  { %286 = vmatpush2.bf16.msra.mxu0 %v1265_v34 }
  0x65   :  { %515 = vmatprep.subr.mxu0 %v1483_v39 }
  0x67   :  { %288 = vmatmul.mubr.bf16.vlgmr.msra.gmra.mxu0 %v93_v37 }
  0x68   :  { %516 = vmatpush1.msra.mxu0 %v1485_v40 }
  0x69   :  { %517 = vmatprep.subr.mxu0 %v1488_v41 }
  0x6a   :  { %518 = vmatpush1.msra.mxu0 %v1491_v42 }
  0x6b   :  { %519 = vmatprep.subr.mxu0 %v1494_v43 }
  0x6c   :  { %520 = vmatpush1.msra.mxu0 %v1497_v44 }
  0x6d   :  { %521 = vmatprep.subr.mxu0 %v1500_v45 }
  0x6e   :  { %522 = vmatpush1.msra.mxu0 %v1503_v46 }
  0x6f   :  { %523 = vmatprep.subr.mxu0 %v1506_v47 }
  0x70   :  { %524 = vmatpush1.msra.mxu0 %v1509_v48 }
  0x71   :  { %525 = vmatprep.subr.mxu0 %v1512_v49 }
  0x72   :  { %526 = vmatpush1.msra.mxu0 %v1515_v50 }
  0x73   :  { %527 = vmatprep.subr.mxu0 %v1518_v51 }
  0x74   :  { %528 = vmatpush1.msra.mxu0 %v1521_v52 }
  0x75   :  { %529 = vmatprep.subr.mxu0 %v1524_v53 }
  0x76   :  { %530 = vmatpush1.msra.mxu0 %v1527_v54 }
  0x77   :  { %531 = vmatprep.subr.mxu0 %v1530_v55 }
  0x78   :  { %532 = vmatpush1.msra.mxu0 %v1533_v56 }
  0x79   :  { %533 = vmatprep.subr.mxu0 %v1536_v57 }
  0x7a   :  { %534 = vmatpush1.msra.mxu0 %v1539_v58 }
  0x7b   :  { %535 = vmatprep.subr.mxu0 %v1542_v59 }
  0x7c   :  { %536 = vmatpush1.msra.mxu0 %v1545_v60 }
  0x7d   :  { %537 = vmatprep.subr.mxu0 %v1548_v61 }
  0x7e   :  { %538 = vmatpush1.msra.mxu0 %v1551_v62 }
  0x7f   :  { %539 = vmatprep.subr.mxu0 %v1554_v63 }
  0x80   :  { %540 = vmatpush1.msra.mxu0 %v1557_v0 }
  0x81   :  { %541 = vmatprep.subr.mxu0 %v1560_v1 }
  0x82   :  { %542 = vmatpush1.msra.mxu0 %v1563_v2 }
  0x83   :  { %543 = vmatprep.subr.mxu0 %v1566_v3 }
  0x84   :  { %544 = vmatpush1.msra.mxu0 %v1569_v4 }
  0x85   :  { %545 = vmatprep.subr.mxu0 %v1572_v5 }
  0x86   :  { %546 = vmatpush1.msra.mxu0 %v1575_v6 }
  0x87   :  { %547 = vmatprep.subr.mxu0 %v1578_v7 }
  0x88   :  { %548 = vmatpush2.msra.mxu0 %v1581_v8 }
  0x89   :  { %549 = vmatprep.subr.mxu0 %v1584_v9 }
  0x8a   :  { %550 = vmatpush2.msra.mxu0 %v1587_v10 }
  0x8b   :  { %551 = vmatprep.subr.mxu0 %v1590_v11 }
  0x8c   :  { %552 = vmatpush2.msra.mxu0 %v1593_v12 }
  0x8d   :  { %553 = vmatprep.subr.mxu0 %v1596_v13 }
  0x8e   :  { %554 = vmatpush2.msra.mxu0 %v1599_v14 }
  0x8f   :  { %555 = vmatprep.subr.mxu0 %v1602_v15 }
  0x90   :  { %556 = vmatpush2.msra.mxu0 %v1605_v16 }
  0x91   :  { %557 = vmatprep.subr.mxu0 %v1608_v17 }
  0x92   :  { %558 = vmatpush2.msra.mxu0 %v1611_v18 }
  0x93   :  { %559 = vmatprep.subr.mxu0 %v1614_v19 }
  0x94   :  { %560 = vmatpush2.msra.mxu0 %v1617_v20 }
  0x95   :  { %561 = vmatprep.subr.mxu0 %v1620_v21 }
  0x96   :  { %562 = vmatpush2.msra.mxu0 %v1623_v22 }
  0x97   :  { %563 = vmatprep.subr.mxu0 %v1626_v23 }
  0x98   :  { %564 = vmatpush2.msra.mxu0 %v1629_v24 }
  0x99   :  { %565 = vmatprep.subr.mxu0 %v1632_v25 }
  0x9a   :  { %566 = vmatpush2.msra.mxu0 %v1635_v26 }
  0x9b   :  { %567 = vmatprep.subr.mxu0 %v1638_v27 }
  0x9c   :  { %568 = vmatpush2.msra.mxu0 %v1641_v28  ;;  %v1266_v28 = vld [vmem:[#allocation7 + $0x200] ss:$8 sps:$4 sm:$0xff]  }
  0x9d   :  { %569 = vmatprep.subr.mxu0 %v1644_v29 }
  0x9e   :  { %570 = vmatpush2.msra.mxu0 %v1647_v30 }
  0x9f   :  { %571 = vmatprep.subr.mxu0 %v1650_v31 }
  0xa0   :  { %572 = vmatpush2.msra.mxu0 %v1653_v32 }
 0x127   :  { %v289_v33 = vpop.f32.mrf.mxu0 }
 0x129   :  { %v291_v34 = vpop.f32.mrf.mxu0 }
 0x12b   :  { %v293_v35 = vpop.f32.mrf.mxu0 }
 0x12c   :  { %v300_v38 = vpack.c.bf16 %v293_v35, %v289_v33  ;;  %v1719_v33 = vld [vmem:[#allocation5 + $0x1c0] sm:$0xff]  ;;  %v1727_v35 = vld [vmem:[#allocation5 + $0x1b0] sm:$0xff] }
 0x12d   :  { %v295_v36 = vpop.f32.mrf.mxu0  ;;  %1987 = vst [vmem:[#allocation32_spill] sm:$0xff] %v1719_v33  ;;  %1989 = vst [vmem:[#allocation34_spill] sm:$0xff] %v1727_v35 }
 0x12e   :  { %v301_v37 = vpack.c.bf16 %v295_v36, %v291_v34  ;;  %v1723_v34 = vld [vmem:[#allocation5 + $0x1b8] sm:$0xff]  ;;  %v1731_v36 = vld [vmem:[#allocation5 + $0x1a8] sm:$0xff] }
 0x12f   :  { %1988 = vst [vmem:[#allocation33_spill] sm:$0xff] %v1723_v34  ;;  %1990 = vst [vmem:[#allocation35_spill] sm:$0xff] %v1731_v36 }
 0x130   :  { %337 = vmatprep.subr.bf16.mxu1 %v301_v37  ;;  %v1735_v37 = vld [vmem:[#allocation5 + $0x1a0] sm:$0xff] }
 0x131   :  { %338 = vmatpush1.bf16.msra.mxu1 %v300_v38  ;;  %v1985_v38 = vld [vmem:[#allocation26_spill] sm:$0xff]  ;;  %1991 = vst [vmem:[#allocation36_spill] sm:$0xff] %v1735_v37 }
 0x132   :  { %430 = vmatprep.subr.mxu1 %v1483_v39 }
 0x134   :  { %1174 = vmatmul.mubr.msk.bf16.vlgmr.msra.gmra.mxu1 %vm319_vm0, %v1266_v28  ;;  %v1716_v28 = vld [vmem:[#allocation5 + $0x1c8] sm:$0xff] }
 0x135   :  { %431 = vmatpush1.msra.mxu1 %v1485_v40  ;;  %1986 = vst [vmem:[#allocation31_spill] sm:$0xff] %v1716_v28  ;;  %573 = vmatprep.subr.mxu0 %v1716_v28 }
 0x136   :  { %432 = vmatprep.subr.mxu1 %v1488_v41  ;;  %574 = vmatpush2.msra.mxu0 %v1719_v33 }
 0x137   :  { %433 = vmatpush1.msra.mxu1 %v1491_v42  ;;  %575 = vmatprep.subr.mxu0 %v1723_v34 }
 0x138   :  { %434 = vmatprep.subr.mxu1 %v1494_v43  ;;  %576 = vmatpush2.msra.mxu0 %v1727_v35 }
 0x139   :  { %435 = vmatpush1.msra.mxu1 %v1497_v44  ;;  %577 = vmatprep.subr.mxu0 %v1731_v36 }
 0x13a   :  { %436 = vmatprep.subr.mxu1 %v1500_v45  ;;  %578 = vmatpush2.msra.mxu0 %v1735_v37 }
 0x13b   :  { %437 = vmatpush1.msra.mxu1 %v1503_v46 }
 0x13c   :  { %438 = vmatprep.subr.mxu1 %v1506_v47 }
 0x13d   :  { %439 = vmatpush1.msra.mxu1 %v1509_v48 }
 0x13e   :  { %440 = vmatprep.subr.mxu1 %v1512_v49 }
 0x13f   :  { %441 = vmatpush1.msra.mxu1 %v1515_v50 }
 0x140   :  { %442 = vmatprep.subr.mxu1 %v1518_v51 }
 0x141   :  { %443 = vmatpush1.msra.mxu1 %v1521_v52 }
 0x142   :  { %444 = vmatprep.subr.mxu1 %v1524_v53 }
 0x143   :  { %445 = vmatpush1.msra.mxu1 %v1527_v54 }
 0x144   :  { %446 = vmatprep.subr.mxu1 %v1530_v55 }
 0x145   :  { %447 = vmatpush1.msra.mxu1 %v1533_v56 }
 0x146   :  { %448 = vmatprep.subr.mxu1 %v1536_v57 }
 0x147   :  { %449 = vmatpush1.msra.mxu1 %v1539_v58 }
 0x148   :  { %450 = vmatprep.subr.mxu1 %v1542_v59 }
 0x149   :  { %451 = vmatpush1.msra.mxu1 %v1545_v60 }
 0x14a   :  { %452 = vmatprep.subr.mxu1 %v1548_v61 }
 0x14b   :  { %453 = vmatpush1.msra.mxu1 %v1551_v62 }
 0x14c   :  { %454 = vmatprep.subr.mxu1 %v1554_v63 }
 0x14d   :  { %455 = vmatpush1.msra.mxu1 %v1557_v0 }
 0x14e   :  { %456 = vmatprep.subr.mxu1 %v1560_v1 }
 0x14f   :  { %457 = vmatpush1.msra.mxu1 %v1563_v2 }
 0x150   :  { %458 = vmatprep.subr.mxu1 %v1566_v3 }
 0x151   :  { %459 = vmatpush1.msra.mxu1 %v1569_v4 }
 0x152   :  { %460 = vmatprep.subr.mxu1 %v1572_v5 }
 0x153   :  { %461 = vmatpush1.msra.mxu1 %v1575_v6 }
 0x154   :  { %462 = vmatprep.subr.mxu1 %v1578_v7 }
 0x155   :  { %463 = vmatpush2.msra.mxu1 %v1581_v8 }
 0x156   :  { %464 = vmatprep.subr.mxu1 %v1584_v9 }
 0x157   :  { %465 = vmatpush2.msra.mxu1 %v1587_v10 }
 0x158   :  { %466 = vmatprep.subr.mxu1 %v1590_v11 }
 0x159   :  { %467 = vmatpush2.msra.mxu1 %v1593_v12 }
 0x15a   :  { %468 = vmatprep.subr.mxu1 %v1596_v13 }
 0x15b   :  { %469 = vmatpush2.msra.mxu1 %v1599_v14 }
 0x15c   :  { %470 = vmatprep.subr.mxu1 %v1602_v15 }
 0x15d   :  { %471 = vmatpush2.msra.mxu1 %v1605_v16 }
 0x15e   :  { %472 = vmatprep.subr.mxu1 %v1608_v17 }
 0x15f   :  { %473 = vmatpush2.msra.mxu1 %v1611_v18 }
 0x160   :  { %474 = vmatprep.subr.mxu1 %v1614_v19  ;;  %v606_v19 = vld [vmem:[#allocation5 + $0x50] sm:$0xff] }
 0x161   :  { %475 = vmatpush2.msra.mxu1 %v1617_v20  ;;  %v605_v20 = vld [vmem:[#allocation5 + $0x48] sm:$0xff] }
 0x162   :  { %476 = vmatprep.subr.mxu1 %v1620_v21 }
 0x163   :  { %477 = vmatpush2.msra.mxu1 %v1623_v22  ;;  %v1272_v22 = vld [vmem:[#allocation7 + $0x164] ss:$8 sps:$4 sm:$0xff]  }
 0x164   :  { %478 = vmatprep.subr.mxu1 %v1626_v23  ;;  %v1269_v23 = vld [vmem:[#allocation7 + $0x174] ss:$8 sps:$4 sm:$0xff]  }
 0x165   :  { %479 = vmatpush2.msra.mxu1 %v1629_v24  ;;  %v1267_v24 = vld [vmem:[#allocation7 + $0x170] ss:$8 sps:$4 sm:$0xff]  }
 0x166   :  { %480 = vmatprep.subr.mxu1 %v1632_v25 }
 0x167   :  { %481 = vmatpush2.msra.mxu1 %v1635_v26 }
 0x168   :  { %482 = vmatprep.subr.mxu1 %v1638_v27 }
 0x169   :  { %483 = vmatpush2.msra.mxu1 %v1985_v38 }
 0x16a   :  { %484 = vmatprep.subr.mxu1 %v1644_v29 }
 0x16b   :  { %485 = vmatpush2.msra.mxu1 %v1647_v30 }
 0x16c   :  { %486 = vmatprep.subr.mxu1 %v1650_v31  ;;  %v302_v31 = vld [vmem:[#allocation5] ss:$8 sm:$0x3] }
 0x16d   :  { %487 = vmatpush2.msra.mxu1 %v1653_v32 }
 0x16e   :  { %488 = vmatprep.subr.mxu1 %v1716_v28 }
 0x16f   :  { %489 = vmatpush2.msra.mxu1 %v1719_v33  ;;  %v304_v33 = vlaneseq }
 0x170   :  { %490 = vmatprep.subr.mxu1 %v1723_v34 }
 0x171   :  { %491 = vmatpush2.msra.mxu1 %v1727_v35  ;;  %v1740_v28 = vshrl.u32 %v304_v33, 7 }
 0x172   :  { %492 = vmatprep.subr.mxu1 %v1731_v36 }
 0x173   :  { %493 = vmatpush2.msra.mxu1 %v1735_v37  ;;  %1992 = vst [vmem:[#allocation37_spill] sm:$0xff] %v1740_v28  ;;  %v1947_v34 = vsub.s32 1, %v1740_v28  ;;  %v1948_v32 = vsub.s32 0, %v1740_v28  ;;  %v1281_v28 = vld [vmem:[#allocation7 + $0x134] ss:$8 sps:$4 sm:$0xff]  }
 0x174   :  { %814 = vmatprep.subr.bf16.mxu1 %v1269_v23 }
 0x175   :  { %v311_v35 = vrot.slane %v302_v31, %v1947_v34  ;;  %v307_v30 = vrot.slane %v302_v31, %v1948_v32  ;;  %v1270_v34 = vld [vmem:[#allocation7 + $0x160] ss:$8 sps:$4 sm:$0xff]   ;;  %v1275_v31 = vld [vmem:[#allocation7 + $0x154] ss:$8 sps:$4 sm:$0xff]   ;;  %v1273_v32 = vld [vmem:[#allocation7 + $0x150] ss:$8 sps:$4 sm:$0xff]  }
 0x1f4   :  { %v357_v29 = vpop.f32.mrf.mxu1 }
 0x1f5   :  { %v358_v27 = vadd.f32 %v357_v29, %v307_v30  ;;  %v1278_v29 = vld [vmem:[#allocation7 + $0x144] ss:$8 sps:$4 sm:$0xff]  }
 0x1f6   :  { %v359_v36 = vpop.f32.mrf.mxu1 }
 0x1f7   :  { %v360_v38 = vadd.f32 %v359_v36, %v311_v35  ;;  %v1276_v36 = vld [vmem:[#allocation7 + $0x140] ss:$8 sps:$4 sm:$0xff]  }
 0x1f8   :  { %v361_v26 = vpop.f32.mrf.mxu1 }
 0x1f9   :  { %494 = vmatprep.mubr.f32.mxu1 %v360_v38  ;;  %v362_v25 = vadd.f32 %v361_v26, %v307_v30  ;;  %v1279_v26 = vld [vmem:[#allocation7 + $0x130] ss:$8 sps:$4 sm:$0xff]  }
 0x1fa   :  { %v363_v37 = vpop.f32.mrf.mxu1  ;;  %495 = vmatmul.mubr.f32.vlgmr.msra.gmra.mxu1 %v358_v27 }
 0x1fb   :  { %v364_v33 = vadd.f32 %v363_v37, %v311_v35  ;;  %815 = vmatpush1.bf16.msra.mxu1 %v1267_v24 }
 0x1fc   :  { %816 = vmatprep.subr.bf16.mxu1 %v1272_v22 }
 0x1fd   :  { %500 = vmatprep.mubr.f32.mxu1 %v364_v33 }
 0x1fe   :  { %501 = vmatmul.mubr.f32.gmra.mxu1 %v362_v25 }
 0x1ff   :  { %817 = vmatpush1.bf16.msra.mxu1 %v1270_v34 }
 0x200   :  { %818 = vmatprep.subr.bf16.mxu1 %v1275_v31 }
 0x203   :  { %819 = vmatpush1.bf16.msra.mxu1 %v1273_v32 }
 0x204   :  { %820 = vmatprep.subr.bf16.mxu1 %v1278_v29 }
 0x207   :  { %821 = vmatpush1.bf16.msra.mxu1 %v1276_v36  ;;  %v1284_v36 = vld [vmem:[#allocation7 + $0x124] ss:$8 sps:$4 sm:$0xff]  }
 0x208   :  { %822 = vmatprep.subr.bf16.mxu1 %v1281_v28  ;;  %v1993_v28 = vmov 0  }
 0x20b   :  { %823 = vmatpush1.bf16.msra.mxu1 %v1279_v26  ;;  %v1282_v26 = vld [vmem:[#allocation7 + $0x120] ss:$8 sps:$4 sm:$0xff]  }
 0x20c   :  { %824 = vmatprep.subr.bf16.mxu1 %v1284_v36  ;;  %v1300_v36 = vld [vmem:[#allocation7 + $0x1c0] ss:$8 sps:$4 sm:$0xff]  }
 0x20f   :  { %825 = vmatpush1.bf16.msra.mxu1 %v1282_v26  ;;  %v1303_v26 = vld [vmem:[#allocation7 + $0x1b0] ss:$8 sps:$4 sm:$0xff]  }
 0x2ba   :  { %v496_v30 = vpop.f32.mrf.mxu1 }
 0x2bb   :  { %v1748_v35 = vsub.f32 %v358_v27, %v496_v30  ;;  %v1285_v30 = vld [vmem:[#allocation7 + $0x110] ss:$8 sps:$4 sm:$0xff]  }
 0x2bc   :  { %v498_v23 = vpop.f32.mrf.mxu1 }
 0x2bd   :  { %v1750_v24 = vsub.f32 %v360_v38, %v498_v23  ;;  %v511_v32 = vmul.f32 %v1748_v35, %v1748_v35  ;;  %v1288_v23 = vld [vmem:[#allocation7 + $0x100] ss:$8 sps:$4 sm:$0xff]  }
 0x2be   :  { %v502_v22 = vpop.f32.mrf.mxu1 }
 0x2bf   :  { %v512_v34 = vmul.f32 %v1750_v24, %v1750_v24  ;;  %v1756_v37 = vsub.f32 %v362_v25, %v502_v22  ;;  %v1287_v25 = vld [vmem:[#allocation7 + $0x114] ss:$8 sps:$4 sm:$0xff]  }
 0x2c0   :  { %v504_v31 = vpop.f32.mrf.mxu1  ;;  %826 = vmatprep.subr.bf16.mxu1 %v1287_v25  ;;  %v1293_v22 = vld [vmem:[#allocation7 + $0x1f4] ss:$8 sps:$4 sm:$0xff]  }
 0x2c1   :  { %v1758_v29 = vsub.f32 %v364_v33, %v504_v31  ;;  %579 = vmatprep.mubr.f32.mxu0 %v512_v34  ;;  %v513_v38 = vmul.f32 %v1756_v37, %v1756_v37  ;;  %827 = vmatpush1.bf16.msra.mxu1 %v1285_v30  ;;  %v1290_v33 = vld [vmem:[#allocation7 + $0x104] ss:$8 sps:$4 sm:$0xff]   ;;  %v1291_v34 = vld [vmem:[#allocation7 + $0x1f0] ss:$8 sps:$4 sm:$0xff]   ;;  %v1294_v31 = vld [vmem:[#allocation7 + $0x1e0] ss:$8 sps:$4 sm:$0xff]  }
 0x2c2   :  { %580 = vmatmul.mubr.f32.vlgmr.msra.gmra.mxu0 %v511_v32  ;;  %828 = vmatprep.subr.bf16.mxu1 %v1290_v33  ;;  %v1296_v32 = vld [vmem:[#allocation7 + $0x1e4] ss:$8 sps:$4 sm:$0xff]   ;;  %v1305_v25 = vld [vmem:[#allocation7 + $0x1b4] ss:$8 sps:$4 sm:$0xff]   ;;  %v1306_v33 = vld [vmem:[#allocation7 + $0x1a0] ss:$8 sps:$4 sm:$0xff]  }
 0x2c3   :  { %v514_v27 = vmul.f32 %v1758_v29, %v1758_v29  ;;  %v1308_v30 = vld [vmem:[#allocation7 + $0x1a4] ss:$8 sps:$4 sm:$0xff]  }
 0x2c5   :  { %585 = vmatprep.mubr.f32.mxu0 %v514_v27  ;;  %829 = vmatpush1.bf16.msra.mxu1 %v1288_v23  ;;  %v1299_v27 = vld [vmem:[#allocation7 + $0x1d4] ss:$8 sps:$4 sm:$0xff]  }
 0x2c6   :  { %586 = vmatmul.mubr.f32.gmra.mxu0 %v513_v38  ;;  %830 = vmatprep.subr.bf16.mxu1 %v1293_v22  ;;  %v1297_v38 = vld [vmem:[#allocation7 + $0x1d0] ss:$8 sps:$4 sm:$0xff]   ;;  %v1311_v23 = vld [vmem:[#allocation7 + $0x194] ss:$8 sps:$4 sm:$0xff]  }
 0x2c7   :  { %914 = vmatprep.mubr.bf16.mxu0 %v1993_v28  ;;  %v1302_v28 = vld [vmem:[#allocation7 + $0x1c4] ss:$8 sps:$4 sm:$0xff]   ;;  %v1309_v22 = vld [vmem:[#allocation7 + $0x190] ss:$8 sps:$4 sm:$0xff]  }
 0x2c9   :  { %831 = vmatpush2.bf16.msra.mxu1 %v1291_v34  ;;  %v1314_v34 = vld [vmem:[#allocation7 + $0x184] ss:$8 sps:$4 sm:$0xff]  }
 0x2ca   :  { %832 = vmatprep.subr.bf16.mxu1 %v1296_v32  ;;  %v1312_v32 = vld [vmem:[#allocation7 + $0x180] ss:$8 sps:$4 sm:$0xff]  }
 0x2cd   :  { %833 = vmatpush2.bf16.msra.mxu1 %v1294_v31 }
 0x2ce   :  { %834 = vmatprep.subr.bf16.mxu1 %v1299_v27 }
 0x2d1   :  { %835 = vmatpush2.bf16.msra.mxu1 %v1297_v38 }
 0x2d2   :  { %836 = vmatprep.subr.bf16.mxu1 %v1302_v28 }
 0x2d5   :  { %837 = vmatpush2.bf16.msra.mxu1 %v1300_v36 }
 0x2d6   :  { %838 = vmatprep.subr.bf16.mxu1 %v1305_v25 }
 0x2d9   :  { %839 = vmatpush2.bf16.msra.mxu1 %v1303_v26 }
 0x2da   :  { %840 = vmatprep.subr.bf16.mxu1 %v1308_v30 }
 0x2dd   :  { %841 = vmatpush2.bf16.msra.mxu1 %v1306_v33 }
 0x2de   :  { %842 = vmatprep.subr.bf16.mxu1 %v1311_v23 }
 0x2e1   :  { %843 = vmatpush2.bf16.msra.mxu1 %v1309_v22 }
 0x2e2   :  { %844 = vmatprep.subr.bf16.mxu1 %v1314_v34  ;;  %v601_v34 = vld [vmem:[#allocation5 + $0x28] sm:$0xff] }
 0x2e5   :  { %845 = vmatpush2.bf16.msra.mxu1 %v1312_v32  ;;  %v600_v32 = vld [vmem:[#allocation5 + $0x20] sm:$0xff] }
 0x2e6   :  { %925 = vmatprep.subr.mxu1 %v1483_v39 }
 0x382   :  { %v581_v31 = vpop.f32.mrf.mxu0 }
 0x383   :  { %v582_v27 = vadd.f32 1e-05, %v581_v31  ;;  %v602_v31 = vld [vmem:[#allocation5 + $0x30] sm:$0xff] }
 0x384   :  { %v583_v38 = vpop.f32.mrf.mxu0 }
 0x385   :  { %1316 = vrsqrt.f32 %v582_v27  ;;  %v584_v28 = vadd.f32 1e-05, %v583_v38 }
 0x386   :  { %v587_v36 = vpop.f32.mrf.mxu0 }
 0x387   :  { %1318 = vrsqrt.f32 %v584_v28  ;;  %v588_v26 = vadd.f32 1e-05, %v587_v36 }
 0x388   :  { %v589_v25 = vpop.f32.mrf.mxu0 }
 0x389   :  { %1320 = vrsqrt.f32 %v588_v26  ;;  %v590_v30 = vadd.f32 1e-05, %v589_v25  ;;  %v603_v26 = vld [vmem:[#allocation5 + $0x38] sm:$0xff]  ;;  %v604_v25 = vld [vmem:[#allocation5 + $0x40] sm:$0xff] }
 0x38b   :  { %1322 = vrsqrt.f32 %v590_v30 }
 0x392   :  { %v1317_v33 = vpop.eup %1316 }
 0x393   :  { %v596_v22 = vmul.f32 %v1317_v33, %v1748_v35  ;;  %v607_v35 = vld [vmem:[#allocation5 + $0x58] sm:$0xff] }
 0x394   :  { %v1319_v23 = vpop.eup %1318 }
 0x395   :  { %v597_v39 = vmul.f32 %v1319_v23, %v1750_v24  ;;  %v608_v36 = vmul.f32 %v600_v32, %v596_v22  ;;  %v2001_v32 = vld [vmem:[#allocation20_spill] sm:$0xff] }
 0x396   :  { %v1321_v21 = vpop.eup %1320 }
 0x397   :  { %v609_v27 = vmul.f32 %v601_v34, %v597_v39  ;;  %v598_v38 = vmul.f32 %v1321_v21, %v1756_v37  ;;  %v612_v15 = vadd.f32 %v608_v36, %v604_v25  ;;  %v2006_v36 = vld [vmem:[#allocation25_spill] sm:$0xff]  ;;  %v2008_v25 = vld [vmem:[#allocation27_spill] sm:$0xff] }
 0x398   :  { %v1323_v28 = vpop.eup %1322 }
 0x399   :  { %v610_v30 = vmul.f32 %v602_v31, %v598_v38  ;;  %v599_v18 = vmul.f32 %v1323_v28, %v1758_v29  ;;  %v613_v17 = vadd.f32 %v609_v27, %v605_v20  ;;  %v1999_v20 = vld [vmem:[#allocation18_spill] sm:$0xff]  ;;  %v2000_v29 = vld [vmem:[#allocation19_spill] sm:$0xff]  ;;  %v2002_v31 = vld [vmem:[#allocation21_spill] sm:$0xff] }
 0x39a   :  { %v2003_v27 = vld [vmem:[#allocation22_spill] sm:$0xff]  ;;  %v2004_v38 = vld [vmem:[#allocation23_spill] sm:$0xff]  ;;  %v2005_v28 = vld [vmem:[#allocation24_spill] sm:$0xff] }
 0x39b   :  { %v614_v33 = vadd.f32 %v610_v30, %v606_v19  ;;  %v611_v16 = vmul.f32 %v603_v26, %v599_v18  ;;  %1324 = vtanh.f32 %v613_v17  ;;  %v1996_v17 = vld [vmem:[#allocation15_spill] sm:$0xff]  ;;  %v1997_v18 = vld [vmem:[#allocation16_spill] sm:$0xff]  ;;  %v1998_v19 = vld [vmem:[#allocation17_spill] sm:$0xff] }
 0x39c   :  { %v2007_v26 = vld [vmem:[#allocation26_spill] sm:$0xff]  ;;  %v2009_v30 = vld [vmem:[#allocation28_spill] sm:$0xff] }
 0x39d   :  { %v615_v24 = vadd.f32 %v611_v16, %v607_v35  ;;  %1326 = vtanh.f32 %v614_v33  ;;  %v1995_v16 = vld [vmem:[#allocation14_spill] sm:$0xff]  ;;  %v2010_v35 = vld [vmem:[#allocation29_spill] sm:$0xff] }
 0x39e   :  { %v2011_v33 = vld [vmem:[#allocation30_spill] sm:$0xff] }
 0x39f   :  { %1328 = vtanh.f32 %v615_v24  ;;  %v2012_v24 = vld [vmem:[#allocation31_spill] sm:$0xff] }
 0x3a0   :  { %1330 = vtanh.f32 %v612_v15  ;;  %v1994_v15 = vld [vmem:[#allocation13_spill] sm:$0xff] }
 0x3a8   :  { %v1325_v39 = vpop.eup %1324 }
 0x3aa   :  { %v1327_v21 = vpop.eup %1326 }
 0x3ac   :  { %v1329_v37 = vpop.eup %1328 }
 0x3ad   :  { %v1331_v23 = vpop.eup %1330  ;;  %v653_v22 = vpack.c.bf16 %v1329_v37, %v1325_v39  ;;  %v2013_v39 = vld [vmem:[#allocation32_spill] sm:$0xff]  ;;  %v2015_v37 = vld [vmem:[#allocation34_spill] sm:$0xff] }
 0x3ae   :  { %v652_v34 = vpack.c.bf16 %v1327_v21, %v1331_v23  ;;  %v2014_v21 = vld [vmem:[#allocation33_spill] sm:$0xff]  ;;  %v2016_v23 = vld [vmem:[#allocation35_spill] sm:$0xff] }
 0x3af   :  { %846 = vmatprep.mubr.bf16.mxu1 %v653_v22  ;;  %v2017_v22 = vld [vmem:[#allocation36_spill] sm:$0xff] }
 0x3b0   :  { %847 = vmatmul.mubr.bf16.vlgmr.msra.gmra.mxu1 %v652_v34 }
 0x3b1   :  { %926 = vmatpush1.msra.mxu1 %v1485_v40 }
 0x3b2   :  { %927 = vmatprep.subr.mxu1 %v1488_v41 }
 0x3b3   :  { %928 = vmatpush1.msra.mxu1 %v1491_v42 }
 0x3b4   :  { %929 = vmatprep.subr.mxu1 %v1494_v43 }
 0x3b5   :  { %930 = vmatpush1.msra.mxu1 %v1497_v44 }
 0x3b6   :  { %931 = vmatprep.subr.mxu1 %v1500_v45 }
 0x3b7   :  { %932 = vmatpush1.msra.mxu1 %v1503_v46 }
 0x3b8   :  { %933 = vmatprep.subr.mxu1 %v1506_v47 }
 0x3b9   :  { %934 = vmatpush1.msra.mxu1 %v1509_v48 }
 0x3ba   :  { %935 = vmatprep.subr.mxu1 %v1512_v49 }
 0x3bb   :  { %936 = vmatpush1.msra.mxu1 %v1515_v50 }
 0x3bc   :  { %937 = vmatprep.subr.mxu1 %v1518_v51 }
 0x3bd   :  { %938 = vmatpush1.msra.mxu1 %v1521_v52 }
 0x3be   :  { %939 = vmatprep.subr.mxu1 %v1524_v53 }
 0x3bf   :  { %940 = vmatpush1.msra.mxu1 %v1527_v54 }
 0x3c0   :  { %941 = vmatprep.subr.mxu1 %v1530_v55 }
 0x3c1   :  { %942 = vmatpush1.msra.mxu1 %v1533_v56 }
 0x3c2   :  { %943 = vmatprep.subr.mxu1 %v1536_v57 }
 0x3c3   :  { %944 = vmatpush1.msra.mxu1 %v1539_v58 }
 0x3c4   :  { %945 = vmatprep.subr.mxu1 %v1542_v59 }
 0x3c5   :  { %946 = vmatpush1.msra.mxu1 %v1545_v60 }
 0x3c6   :  { %947 = vmatprep.subr.mxu1 %v1548_v61 }
 0x3c7   :  { %948 = vmatpush1.msra.mxu1 %v1551_v62 }
 0x3c8   :  { %949 = vmatprep.subr.mxu1 %v1554_v63 }
 0x3c9   :  { %950 = vmatpush1.msra.mxu1 %v1557_v0 }
 0x3ca   :  { %951 = vmatprep.subr.mxu1 %v1560_v1 }
 0x3cb   :  { %952 = vmatpush1.msra.mxu1 %v1563_v2 }
 0x3cc   :  { %953 = vmatprep.subr.mxu1 %v1566_v3 }
 0x3cd   :  { %954 = vmatpush1.msra.mxu1 %v1569_v4 }
 0x3ce   :  { %955 = vmatprep.subr.mxu1 %v1572_v5 }
 0x3cf   :  { %956 = vmatpush1.msra.mxu1 %v1575_v6 }
 0x3d0   :  { %957 = vmatprep.subr.mxu1 %v1578_v7 }
 0x3d1   :  { %958 = vmatpush2.msra.mxu1 %v1581_v8 }
 0x3d2   :  { %959 = vmatprep.subr.mxu1 %v1584_v9 }
 0x3d3   :  { %960 = vmatpush2.msra.mxu1 %v1587_v10 }
 0x3d4   :  { %961 = vmatprep.subr.mxu1 %v1590_v11 }
 0x3d5   :  { %962 = vmatpush2.msra.mxu1 %v1593_v12 }
 0x3d6   :  { %963 = vmatprep.subr.mxu1 %v1596_v13 }
 0x3d7   :  { %964 = vmatpush2.msra.mxu1 %v1599_v14 }
 0x3d8   :  { %965 = vmatprep.subr.mxu1 %v1994_v15 }
 0x3d9   :  { %966 = vmatpush2.msra.mxu1 %v1995_v16 }
 0x3da   :  { %967 = vmatprep.subr.mxu1 %v1996_v17 }
 0x3db   :  { %968 = vmatpush2.msra.mxu1 %v1997_v18 }
 0x3dc   :  { %969 = vmatprep.subr.mxu1 %v1998_v19 }
 0x3dd   :  { %970 = vmatpush2.msra.mxu1 %v1999_v20 }
 0x3de   :  { %971 = vmatprep.subr.mxu1 %v2000_v29 }
 0x3df   :  { %972 = vmatpush2.msra.mxu1 %v2001_v32 }
 0x3e0   :  { %973 = vmatprep.subr.mxu1 %v2002_v31 }
 0x3e1   :  { %974 = vmatpush2.msra.mxu1 %v2003_v27 }
 0x3e2   :  { %975 = vmatprep.subr.mxu1 %v2004_v38 }
 0x3e3   :  { %976 = vmatpush2.msra.mxu1 %v2005_v28 }
 0x3e4   :  { %977 = vmatprep.subr.mxu1 %v2006_v36 }
 0x3e5   :  { %978 = vmatpush2.msra.mxu1 %v2007_v26 }
 0x3e6   :  { %979 = vmatprep.subr.mxu1 %v2008_v25 }
 0x3e7   :  { %980 = vmatpush2.msra.mxu1 %v2009_v30 }
 0x3e8   :  { %981 = vmatprep.subr.mxu1 %v2010_v35 }
 0x3e9   :  { %982 = vmatpush2.msra.mxu1 %v2011_v33  ;;  %v1315_v33 = vld [vmem:[#allocation7 + $0x210] ss:$8 sps:$4 sm:$0xff]  }
 0x3ea   :  { %983 = vmatprep.subr.mxu1 %v2012_v24  ;;  %v2018_v24 = vld [vmem:[#allocation12_spill] sm:$0xff] }
 0x3eb   :  { %984 = vmatpush2.msra.mxu1 %v2013_v39 }
 0x3ec   :  { %985 = vmatprep.subr.mxu1 %v2014_v21 }
 0x3ed   :  { %986 = vmatpush2.msra.mxu1 %v2015_v37 }
 0x3ee   :  { %987 = vmatprep.subr.mxu1 %v2016_v23 }
 0x3ef   :  { %988 = vmatpush2.msra.mxu1 %v2017_v22 }
 0x470   :  { %v848_v34 = vpop.f32.mrf.mxu1 }
 0x472   :  { %v850_v25 = vpop.f32.mrf.mxu1 }
 0x474   :  { %v852_v26 = vpop.f32.mrf.mxu1 }
 0x475   :  { %v859_v35 = vpack.c.bf16 %v852_v26, %v848_v34 }
 0x476   :  { %v854_v30 = vpop.f32.mrf.mxu1 }
 0x477   :  { %v860_v36 = vpack.c.bf16 %v854_v30, %v850_v25 }
 0x479   :  { %896 = vmatprep.subr.bf16.mxu0 %v860_v36  ;;  %v1097_v36 = vld [vmem:[#allocation5 + $0x70] sm:$0xff] }
 0x47a   :  { %897 = vmatpush1.bf16.msra.mxu0 %v859_v35 }
 0x47b   :  { %1010 = vmatprep.subr.mxu0 %v2018_v24  ;;  %v1098_v24 = vld [vmem:[#allocation5 + $0x78] sm:$0xff] }
 0x47d   :  { %1208 = vmatmul.mubr.msk.bf16.vlgmr.msra.gmra.mxu0 %vm319_vm0, %v1315_v33  ;;  %v1101_v33 = vld [vmem:[#allocation5 + $0x90] sm:$0xff] }
 0x47e   :  { %1011 = vmatpush1.msra.mxu0 %v1485_v40  ;;  %v2019_v40 = vld [vmem:[#allocation25_spill] sm:$0xff] }
 0x47f   :  { %1012 = vmatprep.subr.mxu0 %v1488_v41  ;;  %v2020_v41 = vld [vmem:[#allocation26_spill] sm:$0xff] }
 0x480   :  { %1013 = vmatpush1.msra.mxu0 %v1491_v42  ;;  %v2021_v42 = vld [vmem:[#allocation27_spill] sm:$0xff] }
 0x481   :  { %1014 = vmatprep.subr.mxu0 %v1494_v43  ;;  %v2022_v43 = vld [vmem:[#allocation28_spill] sm:$0xff] }
 0x482   :  { %1015 = vmatpush1.msra.mxu0 %v1497_v44  ;;  %v2023_v44 = vld [vmem:[#allocation29_spill] sm:$0xff] }
 0x483   :  { %1016 = vmatprep.subr.mxu0 %v1500_v45  ;;  %v2024_v45 = vld [vmem:[#allocation30_spill] sm:$0xff] }
 0x484   :  { %1017 = vmatpush1.msra.mxu0 %v1503_v46  ;;  %v2025_v46 = vld [vmem:[#allocation31_spill] sm:$0xff] }
 0x485   :  { %1018 = vmatprep.subr.mxu0 %v1506_v47  ;;  %v862_v47 = vld [vmem:[#allocation5 + $0x10] ss:$8 sm:$0x3] }
 0x486   :  { %1019 = vmatpush1.msra.mxu0 %v1509_v48  ;;  %v2026_v48 = vld [vmem:[#allocation37_spill] sm:$0xff] }
 0x487   :  { %1020 = vmatprep.subr.mxu0 %v1512_v49  ;;  %v2027_v49 = vsub.s32 1, %v2026_v48 }
 0x488   :  { %1021 = vmatpush1.msra.mxu0 %v1515_v50 }
 0x489   :  { %1022 = vmatprep.subr.mxu0 %v1518_v51  ;;  %v871_v50 = vrot.slane %v862_v47, %v2027_v49  ;;  %v2028_v51 = vsub.s32 0, %v2026_v48  ;;  %v1350_v48 = vld [vmem:[#allocation2 + $0x10] sm:$0xff] }
 0x48a   :  { %1023 = vmatpush1.msra.mxu0 %v1521_v52 }
 0x48b   :  { %1024 = vmatprep.subr.mxu0 %v1524_v53  ;;  %v867_v52 = vrot.slane %v862_v47, %v2028_v51  ;;  %v1351_v51 = vld [vmem:[#allocation2 + $0x18] sm:$0xff] }
 0x48c   :  { %1025 = vmatpush1.msra.mxu0 %v1527_v54 }
 0x48d   :  { %1026 = vmatprep.subr.mxu0 %v1530_v55 }
 0x48e   :  { %1027 = vmatpush1.msra.mxu0 %v1533_v56 }
 0x48f   :  { %1028 = vmatprep.subr.mxu0 %v1536_v57 }
 0x490   :  { %1029 = vmatpush1.msra.mxu0 %v1539_v58 }
 0x491   :  { %1030 = vmatprep.subr.mxu0 %v1542_v59 }
 0x492   :  { %1031 = vmatpush1.msra.mxu0 %v1545_v60 }
 0x493   :  { %1032 = vmatprep.subr.mxu0 %v1548_v61 }
 0x494   :  { %1033 = vmatpush1.msra.mxu0 %v1551_v62 }
 0x495   :  { %1034 = vmatprep.subr.mxu0 %v1554_v63 }
 0x496   :  { %1035 = vmatpush1.msra.mxu0 %v1557_v0 }
 0x497   :  { %1036 = vmatprep.subr.mxu0 %v1560_v1 }
 0x498   :  { %1037 = vmatpush1.msra.mxu0 %v1563_v2 }
 0x499   :  { %1038 = vmatprep.subr.mxu0 %v1566_v3 }
 0x49a   :  { %1039 = vmatpush1.msra.mxu0 %v1569_v4 }
 0x49b   :  { %1040 = vmatprep.subr.mxu0 %v1572_v5 }
 0x49c   :  { %1041 = vmatpush1.msra.mxu0 %v1575_v6 }
 0x49d   :  { %1042 = vmatprep.subr.mxu0 %v1578_v7 }
 0x49e   :  { %1043 = vmatpush2.msra.mxu0 %v1581_v8 }
 0x49f   :  { %1044 = vmatprep.subr.mxu0 %v1584_v9 }
 0x4a0   :  { %1045 = vmatpush2.msra.mxu0 %v1587_v10 }
 0x4a1   :  { %1046 = vmatprep.subr.mxu0 %v1590_v11 }
 0x4a2   :  { %1047 = vmatpush2.msra.mxu0 %v1593_v12 }
 0x4a3   :  { %1048 = vmatprep.subr.mxu0 %v1596_v13 }
 0x4a4   :  { %1049 = vmatpush2.msra.mxu0 %v1599_v14 }
 0x4a5   :  { %1050 = vmatprep.subr.mxu0 %v1994_v15 }
 0x4a6   :  { %1051 = vmatpush2.msra.mxu0 %v1995_v16 }
 0x4a7   :  { %1052 = vmatprep.subr.mxu0 %v1996_v17 }
 0x4a8   :  { %1053 = vmatpush2.msra.mxu0 %v1997_v18  ;;  %v1095_v18 = vld [vmem:[#allocation5 + $0x60] sm:$0xff] }
 0x4a9   :  { %1054 = vmatprep.subr.mxu0 %v1998_v19 }
 0x4aa   :  { %1055 = vmatpush2.msra.mxu0 %v1999_v20 }
 0x4ab   :  { %1056 = vmatprep.subr.mxu0 %v2000_v29  ;;  %v1099_v29 = vld [vmem:[#allocation5 + $0x80] sm:$0xff] }
 0x4ac   :  { %1057 = vmatpush2.msra.mxu0 %v2001_v32  ;;  %v1096_v32 = vld [vmem:[#allocation5 + $0x68] sm:$0xff] }
 0x4ad   :  { %1058 = vmatprep.subr.mxu0 %v2002_v31 }
 0x4ae   :  { %1059 = vmatpush2.msra.mxu0 %v2003_v27 }
 0x4af   :  { %1060 = vmatprep.subr.mxu0 %v2004_v38 }
 0x4b0   :  { %1061 = vmatpush2.msra.mxu0 %v2005_v28  ;;  %v1100_v28 = vld [vmem:[#allocation5 + $0x88] sm:$0xff] }
 0x4b1   :  { %1062 = vmatprep.subr.mxu0 %v2019_v40 }
 0x4b2   :  { %1063 = vmatpush2.msra.mxu0 %v2020_v41 }
 0x4b3   :  { %1064 = vmatprep.subr.mxu0 %v2021_v42  ;;  %v1348_v42 = vld [vmem:[#allocation2] sm:$0xff] }
 0x4b4   :  { %1065 = vmatpush2.msra.mxu0 %v2022_v43 }
 0x4b5   :  { %1066 = vmatprep.subr.mxu0 %v2023_v44 }
 0x4b6   :  { %1067 = vmatpush2.msra.mxu0 %v2024_v45  ;;  %v1349_v45 = vld [vmem:[#allocation2 + $0x8] sm:$0xff] }
 0x4b7   :  { %1068 = vmatprep.subr.mxu0 %v2025_v46 }
 0x4b8   :  { %1069 = vmatpush2.msra.mxu0 %v2013_v39 }
 0x4b9   :  { %1070 = vmatprep.subr.mxu0 %v2014_v21 }
 0x4ba   :  { %1071 = vmatpush2.msra.mxu0 %v2015_v37 }
 0x4bb   :  { %1072 = vmatprep.subr.mxu0 %v2016_v23  ;;  %v1102_v23 = vld [vmem:[#allocation5 + $0x98] sm:$0xff] }
 0x4bc   :  { %1073 = vmatpush2.msra.mxu0 %v2017_v22 }
 0x53d   :  { %v916_v53 = vpop.f32.mrf.mxu0 }
 0x53e   :  { %v917_v56 = vadd.f32 %v916_v53, %v867_v52 }
 0x53f   :  { %v918_v54 = vpop.f32.mrf.mxu0 }
 0x540   :  { %v919_v55 = vadd.f32 %v918_v54, %v871_v50 }
 0x541   :  { %v920_v57 = vpop.f32.mrf.mxu0 }
 0x542   :  { %989 = vmatprep.mubr.f32.mxu1 %v919_v55  ;;  %v921_v60 = vadd.f32 %v920_v57, %v867_v52 }
 0x543   :  { %v922_v58 = vpop.f32.mrf.mxu0  ;;  %990 = vmatmul.mubr.f32.vlgmr.msra.gmra.mxu1 %v917_v56 }
 0x544   :  { %v923_v59 = vadd.f32 %v922_v58, %v871_v50 }
 0x546   :  { %995 = vmatprep.mubr.f32.mxu1 %v923_v59 }
 0x547   :  { %996 = vmatmul.mubr.f32.gmra.mxu1 %v921_v60 }
 0x603   :  { %v991_v61 = vpop.f32.mrf.mxu1 }
 0x604   :  { %v1002_v62 = vsub.f32 %v917_v56, %v991_v61 }
 0x605   :  { %v993_v63 = vpop.f32.mrf.mxu1 }
 0x606   :  { %v1003_v0 = vsub.f32 %v919_v55, %v993_v63  ;;  %v1006_v3 = vmul.f32 %v1002_v62, %v1002_v62 }
 0x607   :  { %v997_v1 = vpop.f32.mrf.mxu1 }
 0x608   :  { %v1007_v2 = vmul.f32 %v1003_v0, %v1003_v0  ;;  %v1004_v4 = vsub.f32 %v921_v60, %v997_v1 }
 0x609   :  { %v999_v5 = vpop.f32.mrf.mxu1 }
 0x60a   :  { %v1005_v6 = vsub.f32 %v923_v59, %v999_v5  ;;  %1074 = vmatprep.mubr.f32.mxu0 %v1007_v2  ;;  %v1008_v8 = vmul.f32 %v1004_v4, %v1004_v4 }
 0x60b   :  { %1075 = vmatmul.mubr.f32.vlgmr.msra.gmra.mxu0 %v1006_v3 }
 0x60c   :  { %v1009_v7 = vmul.f32 %v1005_v6, %v1005_v6 }
 0x60e   :  { %1080 = vmatprep.mubr.f32.mxu0 %v1009_v7 }
 0x60f   :  { %1081 = vmatmul.mubr.f32.gmra.mxu0 %v1008_v8 }
 0x6cb   :  { %v1076_v9 = vpop.f32.mrf.mxu0 }
 0x6cc   :  { %v1077_v10 = vadd.f32 1e-05, %v1076_v9 }
 0x6cd   :  { %v1078_v11 = vpop.f32.mrf.mxu0 }
 0x6ce   :  { %1332 = vrsqrt.f32 %v1077_v10  ;;  %v1079_v12 = vadd.f32 1e-05, %v1078_v11 }
 0x6cf   :  { %v1082_v13 = vpop.f32.mrf.mxu0 }
 0x6d0   :  { %1334 = vrsqrt.f32 %v1079_v12  ;;  %v1083_v14 = vadd.f32 1e-05, %v1082_v13 }
 0x6d1   :  { %v1084_v15 = vpop.f32.mrf.mxu0 }
 0x6d2   :  { %1336 = vrsqrt.f32 %v1083_v14  ;;  %v1085_v16 = vadd.f32 1e-05, %v1084_v15 }
 0x6d4   :  { %1338 = vrsqrt.f32 %v1085_v16 }
 0x6db   :  { %v1333_v17 = vpop.eup %1332 }
 0x6dc   :  { %v1091_v19 = vmul.f32 %v1333_v17, %v1002_v62 }
 0x6dd   :  { %v1335_v20 = vpop.eup %1334 }
 0x6de   :  { %v1103_v31 = vmul.f32 %v1095_v18, %v1091_v19  ;;  %v1092_v27 = vmul.f32 %v1335_v20, %v1003_v0 }
 0x6df   :  { %v1337_v38 = vpop.eup %1336 }
 0x6e0   :  { %v1107_v26 = vadd.f32 %v1103_v31, %v1099_v29  ;;  %v1104_v25 = vmul.f32 %v1096_v32, %v1092_v27  ;;  %v1093_v30 = vmul.f32 %v1337_v38, %v1004_v4 }
 0x6e1   :  { %v1339_v35 = vpop.eup %1338 }
 0x6e2   :  { %1340 = vtanh.f32 %v1107_v26  ;;  %v1108_v39 = vadd.f32 %v1104_v25, %v1100_v28  ;;  %v1105_v21 = vmul.f32 %v1097_v36, %v1093_v30  ;;  %v1094_v37 = vmul.f32 %v1339_v35, %v1005_v6 }
 0x6e4   :  { %1342 = vtanh.f32 %v1108_v39  ;;  %v1109_v22 = vadd.f32 %v1105_v21, %v1101_v33  ;;  %v1106_v34 = vmul.f32 %v1098_v24, %v1094_v37 }
 0x6e6   :  { %1344 = vtanh.f32 %v1109_v22  ;;  %v1110_v40 = vadd.f32 %v1106_v34, %v1102_v23 }
 0x6e8   :  { %1346 = vtanh.f32 %v1110_v40 }
 0x6ef   :  { %v1341_v41 = vpop.eup %1340 }
 0x6f0   :  { %v1115_v43 = vadd.f32 %v1348_v42, %v1341_v41 }
 0x6f1   :  { %v1343_v44 = vpop.eup %1342 }
 0x6f2   :  { %v1116_v46 = vadd.f32 %v1349_v45, %v1343_v44  ;;  %1119 = vst [vmem:[#allocation8] sm:$0xff] %v1115_v43 }
 0x6f3   :  { %v1345_v47 = vpop.eup %1344 }
 0x6f4   :  { %v1117_v49 = vadd.f32 %v1350_v48, %v1345_v47  ;;  %1120 = vst [vmem:[#allocation8 + $0x8] sm:$0xff] %v1116_v46 }
 0x6f5   :  { %v1347_v50 = vpop.eup %1346 }
 0x6f6   :  { %v1118_v52 = vadd.f32 %v1351_v51, %v1347_v50  ;;  %1121 = vst [vmem:[#allocation8 + $0x10] sm:$0xff] %v1117_v49 }
 0x6f8   :  { %1122 = vst [vmem:[#allocation8 + $0x18] sm:$0xff] %v1118_v52 }
 0x6f9   :  { %1423 = shalt.err (!%p1420_p5)
}
 0x6fa   :  { %1134 = dma.vmem_to_hbm [thread:$0]  %s1129_s2, 512, %s1911_s3, [#allocation4], %s1440_s17, %s1440_s17, %s1441_s18  }
 0x6fb   :  { %1436 = dma.done.wait [#allocation4], 512  }
 0x6fc   :  { %1437 = vsyncadd [#allocation4], 4294966784 }
 0x6fd   :  { %1138 = vsyncpa [#allocation3], 1 }
 0x6fe   :  { %1139 = vsyncpa [#allocation6], 1 }
 0x6ff   :  { %1140 = vsyncpa [#allocation4], 1 }

</bundles_post_ra>
